<compile_context>
chip_gen: v5e
topology: v5e:2x2
jax: 0.10.0
libtpu: 0.0.40
codegen_flags: <defaults>
</compile_context>

<pallas_src>
import math

import jax
import jax.numpy as jnp
from jax.experimental import pallas as pl
from jax.experimental.pallas import tpu as pltpu

_LANE = 128
_BLOCK_BYTES = 1 << 20  # ~1 MiB per block buffer
_MAX_LANE_W = 4096      # cap on the folded lane width


# ---------------------------------------------------------------------------
# Pallas kernel: y = x * scale + bias  (scale/bias broadcast over rows)
# ---------------------------------------------------------------------------
def _normalization_kernel(x_ref, scale_ref, bias_ref, o_ref):
    # x_ref:              (TILE_ROWS, W)
    # scale_ref/bias_ref: (1, W)  -> broadcast over the row (sublane) axis
    x = x_ref[...].astype(jnp.float32)
    o_ref[...] = (x * scale_ref[...] + bias_ref[...]).astype(o_ref.dtype)


def normalization_forward(inputs, mean, var, *, block_bytes=_BLOCK_BYTES):
    """Apply y = (inputs - mean) / var with broadcast over the last axis.

    inputs: [..., F] (float32 or bfloat16)
    mean, var: [F]
    """
    orig_shape = inputs.shape
    orig_dtype = inputs.dtype
    f = orig_shape[-1]
    total = math.prod(orig_shape)

    # Affine form of (x - mean) / var:  x * (1/var) + (-mean/var).
    # TODO(synk): the module divides by var (not std) and has no eps guard;
    # semantics are preserved exactly as specified.
    var_f32 = var.astype(jnp.float32)
    scale = (1.0 / var_f32).reshape(1, f)
    bias = (-mean.astype(jnp.float32) / var_f32).reshape(1, f)

    # ---- choose a lane-dense 2-D view ------------------------------------
    if f % _LANE == 0:
        lane_w, reps = f, 1
    else:
        lcm = (f * _LANE) // math.gcd(f, _LANE)
        if total % lcm == 0 and lcm <= _MAX_LANE_W:
            lane_w, reps = lcm, lcm // f
        else:
            lane_w, reps = f, 1  # masked-store fallback (small/odd shapes)

    x2d = inputs.reshape(-1, lane_w)
    scale2d = jnp.tile(scale, (1, reps)) if reps > 1 else scale
    bias2d = jnp.tile(bias, (1, reps)) if reps > 1 else bias
    rows = x2d.shape[0]

    itemsize = jnp.dtype(orig_dtype).itemsize

    # ---- block rows: ~block_bytes per buffer, multiple of 8 sublanes ------
    rows_per_block = max(8, ((block_bytes // (lane_w * itemsize)) // 8) * 8)
    if rows <= rows_per_block:
        rows_per_block = rows  # full-extent block (always legal)
        grid = (1,)
    else:
        grid = (pl.cdiv(rows, rows_per_block),)

    block_buf_bytes = rows_per_block * lane_w * itemsize
    # 2 double-buffered streams (x in, y out) + tiny stats, with headroom.
    vmem_limit = max(16 * 1024 * 1024, min(64 * 1024 * 1024, 6 * block_buf_bytes))

    cost = pl.CostEstimate(
        flops=2 * total,
        transcendentals=0,
        bytes_accessed=2 * total * itemsize + 2 * lane_w * 4,
    )

    out2d = pl.pallas_call(
        _normalization_kernel,
        out_shape=jax.ShapeDtypeStruct((rows, lane_w), orig_dtype),
        grid_spec=pltpu.PrefetchScalarGridSpec(
            num_scalar_prefetch=0,
            grid=grid,
            in_specs=[
                pl.BlockSpec((rows_per_block, lane_w), lambda i: (i, 0)),
                pl.BlockSpec((1, lane_w), lambda i: (0, 0)),
                pl.BlockSpec((1, lane_w), lambda i: (0, 0)),
            ],
            out_specs=pl.BlockSpec((rows_per_block, lane_w), lambda i: (i, 0)),
        ),
        compiler_params=pltpu.CompilerParams(
            dimension_semantics=("parallel",),
            vmem_limit_bytes=int(vmem_limit),
        ),
        cost_estimate=cost,
    )(x2d, scale2d, bias2d)

    return out2d.reshape(orig_shape)


# ---------------------------------------------------------------------------
# Deterministic "dataset" statistics (mirrors the PyTorch __init__ logic)
# ---------------------------------------------------------------------------
def compute_dataset_stats(dataset_samples):
    """dataset_samples: list of arrays, each [n_vertices, n_features]."""
    n_samples = 0
    mean_acc = 0.0
    for s in dataset_samples:
        n_samples += s.shape[0]
        mean_acc = mean_acc + jnp.sum(s, axis=-2)
    mean = mean_acc / n_samples

    var_acc = 0.0
    for s in dataset_samples:
        var_acc = var_acc + jnp.sum((s - mean) ** 2, axis=-2)
    var = var_acc / (n_samples - 1)
    return mean, var


if __name__ == "__main__":
    key = jax.random.PRNGKey(0)
    k1, k2, k3, k4, k5, k6, k7 = jax.random.split(key, 7)

    # ---- main case (F=32 divides 128 -> folded lane-dense path) ------------
    n_vertices = 64
    n_features = 32
    batch = 2

    dataset_samples = [
        jax.random.normal(k1, (n_vertices, n_features), dtype=jnp.float32) * 2.0 + 1.0,
        jax.random.normal(k2, (n_vertices, n_features), dtype=jnp.float32) * 0.5 - 3.0,
        jax.random.normal(k3, (n_vertices, n_features), dtype=jnp.float32) * 1.5,
    ]
    mean, var = compute_dataset_stats(dataset_samples)

    x = jax.random.normal(k4, (batch, n_vertices, n_features), dtype=jnp.float32)
    y = jax.block_until_ready(normalization_forward(x, mean, var))
    y_ref = (x - mean) / var
    assert y.shape == x.shape
    assert jnp.allclose(y, y_ref, atol=1e-5, rtol=1e-4), "mismatch (lane-dense path)"

    # ---- bf16 in -> bf16 out on the same path -------------------------------
    xb = x.astype(jnp.bfloat16)
    yb = jax.block_until_ready(normalization_forward(xb, mean, var))
    yb_ref = ((xb.astype(jnp.float32) - mean) / var)
    assert yb.dtype == jnp.bfloat16
    assert jnp.allclose(yb.astype(jnp.float32), yb_ref, atol=5e-2, rtol=2e-2), \
        "mismatch (bf16 path)"

    # ---- lcm-folded case (F=96 does not divide 128, total % 384 == 0) ------
    f3 = 96
    x3 = jax.random.normal(k6, (3, 4, f3), dtype=jnp.float32) * 0.8 - 0.2
    mean3 = jnp.mean(x3.reshape(-1, f3), axis=0)
    var3 = jnp.var(x3.reshape(-1, f3), axis=0) + 0.5
    y3 = jax.block_until_ready(normalization_forward(x3, mean3, var3))
    y3_ref = (x3 - mean3) / var3
    assert jnp.allclose(y3, y3_ref, atol=1e-5, rtol=1e-4), "mismatch (lcm path)"

    # ---- fallback case (F=5, tiny ragged shapes) ----------------------------
    f2 = 5
    v2 = 10
    x2 = jax.random.normal(k5, (3, v2, f2), dtype=jnp.float32) * 1.3 + 0.7
    mean2 = jnp.mean(x2.reshape(-1, f2), axis=0)
    var2 = jnp.var(x2.reshape(-1, f2), axis=0) + 1.0
    y2 = jax.block_until_ready(normalization_forward(x2, mean2, var2))
    y2_ref = (x2 - mean2) / var2
    assert jnp.allclose(y2, y2_ref, atol=1e-5, rtol=1e-4), "mismatch (fallback path)"

    print("KERNEL_OK")
</pallas_src>

<mosaic_0001>
module attributes {stable_mosaic.version = 11 : i64} {
  func.func @_normalization_kernel(%arg0: i32, %arg1: memref<32x128xf32, #tpu.memory_space<vmem>>, %arg2: memref<1x128xf32, #tpu.memory_space<vmem>>, %arg3: memref<1x128xf32, #tpu.memory_space<vmem>>, %arg4: memref<32x128xf32, #tpu.memory_space<vmem>>) attributes {dimension_semantics = [#tpu.dimension_semantics<parallel>], iteration_bounds = array<i64: 1>, scalar_prefetch = 0 : i64, scratch_operands = 0 : i64, tpu.core_type = #tpu.core_type<tc>, window_params = [{transform_indices = @transform_0, window_bounds = array<i64: 32, 128>}, {pipeline_mode = #tpu.pipeline_mode<synchronous>, transform_indices = @transform_1, window_bounds = array<i64: 1, 128>}, {pipeline_mode = #tpu.pipeline_mode<synchronous>, transform_indices = @transform_2, window_bounds = array<i64: 1, 128>}, {transform_indices = @transform_3, window_bounds = array<i64: 32, 128>}]} {
    %c0 = arith.constant 0 : index
    %c0_0 = arith.constant 0 : index
    %0 = vector.load %arg1[%c0, %c0_0] : memref<32x128xf32, #tpu.memory_space<vmem>>, vector<32x128xf32>
    %c0_1 = arith.constant 0 : index
    %c0_2 = arith.constant 0 : index
    %1 = vector.load %arg2[%c0_1, %c0_2] : memref<1x128xf32, #tpu.memory_space<vmem>>, vector<1x128xf32>
    %2 = vector.broadcast %1 : vector<1x128xf32> to vector<32x128xf32>
    %3 = arith.mulf %0, %2 : vector<32x128xf32>
    %c0_3 = arith.constant 0 : index
    %c0_4 = arith.constant 0 : index
    %4 = vector.load %arg3[%c0_3, %c0_4] : memref<1x128xf32, #tpu.memory_space<vmem>>, vector<1x128xf32>
    %5 = vector.broadcast %4 : vector<1x128xf32> to vector<32x128xf32>
    %6 = arith.addf %3, %5 : vector<32x128xf32>
    %c0_5 = arith.constant 0 : index
    %c0_6 = arith.constant 0 : index
    %7 = vector.load %arg4[%c0_5, %c0_6] : memref<32x128xf32, #tpu.memory_space<vmem>>, vector<32x128xf32>
    tpu.vector_store %arg4[%c0_5, %c0_6], %6 {strides = array<i32>} : memref<32x128xf32, #tpu.memory_space<vmem>>, vector<32x128xf32>,
    return
  }
  func.func @transform_0(%arg0: i32) -> (i32, i32) {
    %c0_i32 = arith.constant 0 : i32
    %c0_i32_0 = arith.constant 0 : i32
    return %arg0, %c0_i32 : i32, i32
  }
  func.func @transform_1(%arg0: i32) -> (i32, i32) {
    %c0_i32 = arith.constant 0 : i32
    %c0_i32_0 = arith.constant 0 : i32
    %c0_i32_1 = arith.constant 0 : i32
    return %c0_i32, %c0_i32_0 : i32, i32
  }
  func.func @transform_2(%arg0: i32) -> (i32, i32) {
    %c0_i32 = arith.constant 0 : i32
    %c0_i32_0 = arith.constant 0 : i32
    %c0_i32_1 = arith.constant 0 : i32
    return %c0_i32, %c0_i32_0 : i32, i32
  }
  func.func @transform_3(%arg0: i32) -> (i32, i32) {
    %c0_i32 = arith.constant 0 : i32
    %c0_i32_0 = arith.constant 0 : i32
    return %arg0, %c0_i32 : i32, i32
  }
}

</mosaic_0001>

<bundles_post_ra>
// kernel: tpu_custom_call.1
= control target key start
LH: loop header
LB: loop body
LE: loop exit
PB: predicated region body
PF: predicated region fallthrough
CT: control target
= control target key end

     0   :  { %8 = vsyncpa [#allocation3], 0  ;;  %s217_s0 = inlined_call_operand.hbm [shape: f32[32,128], index: 0, kind: input, shape index: {}]   ;;  %s218_s1 = inlined_call_operand.hbm [shape: f32[1,128], index: 1, kind: input, shape index: {}]   ;;  %s219_s2 = inlined_call_operand.vmem [shape: f32[1,128], index: 2, kind: input, shape index: {}]   ;;  %s220_s3 = inlined_call_operand.hbm [shape: f32[32,128], index: 3, kind: output, shape index: {}]  }
   0x1   :  { %9 = vsyncpa [#allocation6], 0 }
   0x2   :  { %10 = vsyncpa [#allocation4], 0  ;;  %s15_s14 = sshll.u32 %s217_s0, 4  ;;  %s174_s15 = smov [#allocation2]   ;;  %s16_s14 = int_to_ptr.hbm [resolvable:$true] %s15_s14 }
   0x3   :  { %s17_s16 = sshll.u32 %s174_s15, 4  ;;  %s29_s19 = sshll.u32 %s218_s1, 4  ;;  %s18_s16 = int_to_ptr.vmem [resolvable:$true] %s17_s16  ;;  %s30_s19 = int_to_ptr.hbm [resolvable:$true] %s29_s19 }
   0x4   :  { %s175_s20 = smov 128   ;;  %s176_s21 = smov 8  }
   0x5   :  { %23 = dma.hbm_to_vmem [thread:$0]  %s16_s14, 512, %s18_s16, [#allocation3], %s175_s20, %s175_s20, %s176_s21  }
   0x6   :  { %s177_s22 = smov [#allocation5]  }
   0x7   :  { %s31_s23 = sshll.u32 %s177_s22, 4  ;;  %s32_s23 = int_to_ptr.vmem [resolvable:$true] %s31_s23 }
   0x8   :  { %34 = dma.hbm_to_vmem [thread:$0]  %s30_s19, 16, %s32_s23, [#allocation6]  }
   0x9   :  { %168 = dma.done.wait [#allocation3], 512  }
   0xa   :  { %169 = vsyncadd [#allocation3], 4294966784 }
   0xb   :  { %170 = dma.done.wait [#allocation6], 16  }
   0xc   :  { %171 = vsyncadd [#allocation6], 4294967280  ;;  %v45_v0 = vld [vmem:[#allocation2] sm:$0xff]  ;;  %v46_v3 = vld [vmem:[#allocation2 + $0x8] sm:$0xff]  ;;  %s178_s1 = smov [#allocation7]   ;;  %s75_s28 = sshll.u32 %s220_s3, 4  ;;  %s76_s28 = int_to_ptr.hbm [resolvable:$true] %s75_s28 }
   0xd   :  { %v94_v1 = vld [vmem:[#allocation5] ss:$0 sm:$0xff]  ;;  %v47_v6 = vld [vmem:[#allocation2 + $0x10] sm:$0xff]  ;;  %v48_v7 = vld [vmem:[#allocation2 + $0x18] sm:$0xff]  ;;  %s73_s25 = sshll.u32 %s178_s1, 4  ;;  %s74_s25 = int_to_ptr.vmem [resolvable:$true] %s73_s25 }
   0xe   :  { %v95_v2 = vld [vmem:[%s219_s2] ss:$0 sm:$0xff]  ;;  %v53_v4 = vmul.f32 %v94_v1, %v45_v0  ;;  %v54_v5 = vmul.f32 %v94_v1, %v46_v3  ;;  %v55_v8 = vmul.f32 %v94_v1, %v47_v6  ;;  %v56_v9 = vmul.f32 %v94_v1, %v48_v7 }
  0x10   :  { %v61_v10 = vadd.f32 %v95_v2, %v53_v4  ;;  %v62_v11 = vadd.f32 %v95_v2, %v54_v5  ;;  %v63_v12 = vadd.f32 %v95_v2, %v55_v8  ;;  %v64_v13 = vadd.f32 %v95_v2, %v56_v9 }
  0x12   :  { %65 = vst [vmem:[#allocation7] sm:$0xff] %v61_v10 }
  0x13   :  { %66 = vst [vmem:[#allocation7 + $0x8] sm:$0xff] %v62_v11 }
  0x14   :  { %67 = vst [vmem:[#allocation7 + $0x10] sm:$0xff] %v63_v12 }
  0x15   :  { %68 = vst [vmem:[#allocation7 + $0x18] sm:$0xff] %v64_v13 }
  0x16   :  { %81 = dma.vmem_to_hbm [thread:$0]  %s74_s25, 512, %s76_s28, [#allocation4], %s175_s20, %s175_s20, %s176_s21  }
  0x17   :  { %172 = dma.done.wait [#allocation4], 512  }
  0x18   :  { %173 = vsyncadd [#allocation4], 4294966784 }
  0x19   :  { %86 = vsyncpa [#allocation3], 1 }
  0x1a   :  { %87 = vsyncpa [#allocation6], 1 }
  0x1b   :  { %88 = vsyncpa [#allocation4], 1 }

</bundles_post_ra>
